<compile_context>
chip_gen: v7x
topology: tpu7x:2x2x1
jax: 0.10.0
libtpu: 0.0.40
codegen_flags: <defaults>
</compile_context>

<pallas_src>
import functools

import jax
import jax.numpy as jnp
from jax.experimental import pallas as pl
from jax.experimental.pallas import tpu as pltpu

LANE = 128
SUBLANE = 8


def _round_up(x, m):
    return ((x + m - 1) // m) * m


def _cdiv(a, b):
    return -(-a // b)


def _choose_batch_tile(batch, block_batch):
    """Pick a sublane-aligned batch tile.

    Goals:
      (a) tiles near block_batch to amortize the ~0.35 us per-grid-step cost,
      (b) an even number (>= 2) of grid steps whenever the batch is big enough,
          so the "parallel" batch axis shards evenly across v7x's two TCs,
      (c) tb is a multiple of 8 (sublane rule) -- or the full batch when the
          batch itself is tiny (full-dim blocks are always legal).
    """
    if batch <= SUBLANE:
        return batch                      # full-dim block: always legal
    rows = _round_up(batch, SUBLANE)
    bb = max(SUBLANE, _round_up(block_batch, SUBLANE))
    n_tiles = max(2, _cdiv(rows, bb))     # >= 2 steps for dual-TC sharding
    if n_tiles % 2:
        n_tiles += 1                      # even step count -> balanced TC split
    tb = _round_up(_cdiv(rows, n_tiles), SUBLANE)
    return min(tb, bb)


def dqn_mlp_kernel(x_ref, w1_ref, b1_ref, w2_ref, b2_ref, w3_ref, b3_ref, o_ref):
    """One batch tile of the 3-layer MLP.

    Layer 1 (K = n_state, tiny): unrolled fp32 broadcast-FMA on the VPU/XLU
    (hidden under the MXU; see header comment for the roofline argument).
    Layers 2/3: bf16 MXU inputs, fp32 accumulation; bias add + ReLU in fp32.
    """
    x = x_ref[...]            # (tb, n_state)  fp32
    w1 = w1_ref[...]          # (n_state, H)   fp32
    n_state = x.shape[1]

    # ---- layer 1: relu(x @ w1 + b1) via n_state broadcast FMAs (static unroll).
    h1 = jnp.broadcast_to(b1_ref[...], (x.shape[0], w1.shape[1]))
    for k in range(n_state):
        h1 = h1 + x[:, k:k + 1] * w1[k:k + 1, :]
    h1 = jnp.maximum(h1, 0.0)

    # ---- layer 2: relu(h1 @ w2 + b2); w2 is stored bf16, fp32 accumulate.
    h2 = jnp.dot(h1.astype(jnp.bfloat16), w2_ref[...],
                 preferred_element_type=jnp.float32) + b2_ref[...]
    h2 = jnp.maximum(h2, 0.0)

    # ---- layer 3: h2 @ w3 + b3; w3/b3 lane-padded to a multiple of 128 so the
    # final matmul and the output store are lane-dense (unmasked vst).
    out = jnp.dot(h2.astype(jnp.bfloat16), w3_ref[...],
                  preferred_element_type=jnp.float32) + b3_ref[...]
    o_ref[...] = out.astype(o_ref.dtype)


@functools.partial(jax.jit, static_argnames=("block_batch",))
def dqn_forward(x, params, *, block_batch=512):
    w1, b1, w2, b2, w3, b3 = params
    batch, n_state = x.shape
    n_hidden = w1.shape[1]
    n_action = w3.shape[1]

    # Lane-pad the tiny output dim (e.g. 2 -> 128): zero-padded columns of w3/b3
    # keep the last matmul and the output store lane-dense. Sliced off below.
    n_out_pad = _round_up(max(n_action, LANE), LANE)
    w3p = jnp.zeros((n_hidden, n_out_pad), jnp.float32).at[:, :n_action].set(w3)
    b3p = jnp.zeros((1, n_out_pad), jnp.float32).at[:, :n_action].set(b3)

    # bf16 weights for the MXU layers (halves weight DMA); w1/biases stay fp32.
    w2_bf = w2.astype(jnp.bfloat16)
    w3_bf = w3p.astype(jnp.bfloat16)

    # Batch tiling: sublane-aligned tile, NO wrapper-side padding -- Pallas pads
    # reads / masks writes for the ragged last block.
    tb = _choose_batch_tile(batch, block_batch)
    grid = (_cdiv(batch, tb),)

    const = lambda i: (0, 0)  # weights/biases resident in VMEM across grid steps
    out = pl.pallas_call(
        dqn_mlp_kernel,
        out_shape=jax.ShapeDtypeStruct((batch, n_out_pad), jnp.float32),
        grid=grid,
        in_specs=[
            pl.BlockSpec((tb, n_state), lambda i: (i, 0)),       # x (batch-tiled)
            pl.BlockSpec((n_state, n_hidden), const),            # w1 (fp32, VPU)
            pl.BlockSpec((1, n_hidden), const),                  # b1
            pl.BlockSpec((n_hidden, n_hidden), const),           # w2 (bf16)
            pl.BlockSpec((1, n_hidden), const),                  # b2
            pl.BlockSpec((n_hidden, n_out_pad), const),          # w3 (bf16, padded)
            pl.BlockSpec((1, n_out_pad), const),                 # b3 (padded)
        ],
        out_specs=pl.BlockSpec((tb, n_out_pad), lambda i: (i, 0)),
        compiler_params=pltpu.CompilerParams(
            dimension_semantics=("parallel",)),
    )(x, w1, b1, w2_bf, b2, w3_bf, b3p)

    return out[:, :n_action]


def init_params(key, n_state=4, n_action=2, n_hidden=128):
    """Deterministic synthetic init (uniform, PyTorch-Linear-style fan-in bound)."""
    ks = jax.random.split(key, 6)

    def linear(kw, kb, fan_in, fan_out):
        bound = 1.0 / jnp.sqrt(fan_in)
        w = jax.random.uniform(kw, (fan_in, fan_out), jnp.float32, -bound, bound)
        b = jax.random.uniform(kb, (1, fan_out), jnp.float32, -bound, bound)
        return w, b

    w1, b1 = linear(ks[0], ks[1], n_state, n_hidden)
    w2, b2 = linear(ks[2], ks[3], n_hidden, n_hidden)
    w3, b3 = linear(ks[4], ks[5], n_hidden, n_action)
    return (w1, b1, w2, b2, w3, b3)


def _references(x, params):
    w1, b1, w2, b2, w3, b3 = params
    hi = jax.lax.Precision.HIGHEST

    # True-fp32 reference (PyTorch-equivalent math).
    r = jnp.maximum(jnp.dot(x, w1, precision=hi) + b1, 0.0)
    r = jnp.maximum(jnp.dot(r, w2, precision=hi) + b2, 0.0)
    ref32 = jnp.dot(r, w3, precision=hi) + b3

    # Reference matching the kernel's precision (fp32 layer 1, bf16 MXU layers 2/3).
    h1 = jnp.maximum(jnp.dot(x, w1, precision=hi) + b1, 0.0)
    h2 = jnp.maximum(
        jnp.dot(h1.astype(jnp.bfloat16), w2.astype(jnp.bfloat16),
                preferred_element_type=jnp.float32) + b2, 0.0)
    refbf = jnp.dot(h2.astype(jnp.bfloat16), w3.astype(jnp.bfloat16),
                    preferred_element_type=jnp.float32) + b3
    return ref32, refbf


if __name__ == "__main__":
    key = jax.random.PRNGKey(0)
    k_params, k_x, k_x2 = jax.random.split(key, 3)

    n_state, n_action, n_hidden = 4, 2, 128
    params = init_params(k_params, n_state, n_action, n_hidden)

    # Small case (single grid step, exact-fit blocks).
    batch = 8
    x = jax.random.normal(k_x, (batch, n_state), jnp.float32)
    out = jax.block_until_ready(dqn_forward(x, params))
    ref32, refbf = _references(x, params)
    assert out.shape == (batch, n_action)
    assert jnp.allclose(out, refbf, atol=1e-2, rtol=1e-2), "mismatch vs bf16-matched ref"
    assert jnp.allclose(out, ref32, atol=1e-1, rtol=1e-1), "mismatch vs fp32 ref"

    # Larger, non-multiple batch: exercises the even 2-step grid + ragged last block
    # (no wrapper padding).
    batch2 = 300
    x2 = jax.random.normal(k_x2, (batch2, n_state), jnp.float32)
    out2 = jax.block_until_ready(dqn_forward(x2, params))
    ref32_2, refbf_2 = _references(x2, params)
    assert out2.shape == (batch2, n_action)
    assert jnp.allclose(out2, refbf_2, atol=1e-2, rtol=1e-2)
    assert jnp.allclose(out2, ref32_2, atol=1e-1, rtol=1e-1)

    print("KERNEL_OK")
</pallas_src>

<mosaic_0001>
module attributes {stable_mosaic.version = 11 : i64} {
  func.func @dqn_mlp_kernel(%arg0: i32, %arg1: memref<8x4xf32, #tpu.memory_space<vmem>>, %arg2: memref<4x128xf32, #tpu.memory_space<vmem>>, %arg3: memref<1x128xf32, #tpu.memory_space<vmem>>, %arg4: memref<128x128xbf16, #tpu.memory_space<vmem>>, %arg5: memref<1x128xf32, #tpu.memory_space<vmem>>, %arg6: memref<128x128xbf16, #tpu.memory_space<vmem>>, %arg7: memref<1x128xf32, #tpu.memory_space<vmem>>, %arg8: memref<8x128xf32, #tpu.memory_space<vmem>>) attributes {dimension_semantics = [#tpu.dimension_semantics<parallel>], iteration_bounds = array<i64: 1>, scalar_prefetch = 0 : i64, scratch_operands = 0 : i64, tpu.core_type = #tpu.core_type<tc>, window_params = [{transform_indices = @transform_0, window_bounds = array<i64: 8, 4>}, {pipeline_mode = #tpu.pipeline_mode<synchronous>, transform_indices = @transform_1, window_bounds = array<i64: 4, 128>}, {pipeline_mode = #tpu.pipeline_mode<synchronous>, transform_indices = @transform_2, window_bounds = array<i64: 1, 128>}, {pipeline_mode = #tpu.pipeline_mode<synchronous>, transform_indices = @transform_3, window_bounds = array<i64: 128, 128>}, {pipeline_mode = #tpu.pipeline_mode<synchronous>, transform_indices = @transform_4, window_bounds = array<i64: 1, 128>}, {pipeline_mode = #tpu.pipeline_mode<synchronous>, transform_indices = @transform_5, window_bounds = array<i64: 128, 128>}, {pipeline_mode = #tpu.pipeline_mode<synchronous>, transform_indices = @transform_6, window_bounds = array<i64: 1, 128>}, {transform_indices = @transform_7, window_bounds = array<i64: 8, 128>}]} {
    %c0 = arith.constant 0 : index
    %c0_0 = arith.constant 0 : index
    %0 = vector.load %arg1[%c0, %c0_0] : memref<8x4xf32, #tpu.memory_space<vmem>>, vector<8x4xf32>
    %c0_1 = arith.constant 0 : index
    %c0_2 = arith.constant 0 : index
    %1 = vector.load %arg2[%c0_1, %c0_2] : memref<4x128xf32, #tpu.memory_space<vmem>>, vector<4x128xf32>
    %c0_3 = arith.constant 0 : index
    %c0_4 = arith.constant 0 : index
    %2 = vector.load %arg3[%c0_3, %c0_4] : memref<1x128xf32, #tpu.memory_space<vmem>>, vector<1x128xf32>
    %3 = vector.shape_cast %2 : vector<1x128xf32> to vector<1x128xf32>
    %4 = vector.broadcast %3 : vector<1x128xf32> to vector<8x128xf32>
    %5 = vector.extract_strided_slice %0 {offsets = [0, 0], sizes = [8, 1], strides = [1, 1]} : vector<8x4xf32> to vector<8x1xf32>
    %6 = vector.extract_strided_slice %1 {offsets = [0, 0], sizes = [1, 128], strides = [1, 1]} : vector<4x128xf32> to vector<1x128xf32>
    %7 = vector.broadcast %5 : vector<8x1xf32> to vector<8x128xf32>
    %8 = vector.broadcast %6 : vector<1x128xf32> to vector<8x128xf32>
    %9 = arith.mulf %7, %8 : vector<8x128xf32>
    %10 = arith.addf %4, %9 : vector<8x128xf32>
    %11 = vector.extract_strided_slice %0 {offsets = [0, 1], sizes = [8, 1], strides = [1, 1]} : vector<8x4xf32> to vector<8x1xf32>
    %12 = vector.extract_strided_slice %1 {offsets = [1, 0], sizes = [1, 128], strides = [1, 1]} : vector<4x128xf32> to vector<1x128xf32>
    %13 = vector.broadcast %11 : vector<8x1xf32> to vector<8x128xf32>
    %14 = vector.broadcast %12 : vector<1x128xf32> to vector<8x128xf32>
    %15 = arith.mulf %13, %14 : vector<8x128xf32>
    %16 = arith.addf %10, %15 : vector<8x128xf32>
    %17 = vector.extract_strided_slice %0 {offsets = [0, 2], sizes = [8, 1], strides = [1, 1]} : vector<8x4xf32> to vector<8x1xf32>
    %18 = vector.extract_strided_slice %1 {offsets = [2, 0], sizes = [1, 128], strides = [1, 1]} : vector<4x128xf32> to vector<1x128xf32>
    %19 = vector.broadcast %17 : vector<8x1xf32> to vector<8x128xf32>
    %20 = vector.broadcast %18 : vector<1x128xf32> to vector<8x128xf32>
    %21 = arith.mulf %19, %20 : vector<8x128xf32>
    %22 = arith.addf %16, %21 : vector<8x128xf32>
    %23 = vector.extract_strided_slice %0 {offsets = [0, 3], sizes = [8, 1], strides = [1, 1]} : vector<8x4xf32> to vector<8x1xf32>
    %24 = vector.extract_strided_slice %1 {offsets = [3, 0], sizes = [1, 128], strides = [1, 1]} : vector<4x128xf32> to vector<1x128xf32>
    %25 = vector.broadcast %23 : vector<8x1xf32> to vector<8x128xf32>
    %26 = vector.broadcast %24 : vector<1x128xf32> to vector<8x128xf32>
    %27 = arith.mulf %25, %26 : vector<8x128xf32>
    %28 = arith.addf %22, %27 : vector<8x128xf32>
    %cst = arith.constant 0.000000e+00 : f32
    %29 = vector.broadcast %cst : f32 to vector<8x128xf32>
    %30 = arith.maximumf %28, %29 : vector<8x128xf32>
    %31 = arith.truncf %30 : vector<8x128xf32> to vector<8x128xbf16>
    %c0_5 = arith.constant 0 : index
    %c0_6 = arith.constant 0 : index
    %32 = vector.load %arg4[%c0_5, %c0_6] : memref<128x128xbf16, #tpu.memory_space<vmem>>, vector<128x128xbf16>
    %cst_7 = arith.constant dense<0.000000e+00> : vector<8x128xf32>
    %33 = tpu.matmul %31, %32, %cst_7 {dimension_numbers = #tpu.dot_dimension_numbers<[1], [0], [0], [1], [0, 0, 1, 1], [], []>} : vector<8x128xbf16>, vector<128x128xbf16>, vector<8x128xf32> -> vector<8x128xf32>
    %c0_8 = arith.constant 0 : index
    %c0_9 = arith.constant 0 : index
    %34 = vector.load %arg5[%c0_8, %c0_9] : memref<1x128xf32, #tpu.memory_space<vmem>>, vector<1x128xf32>
    %35 = vector.broadcast %34 : vector<1x128xf32> to vector<8x128xf32>
    %36 = arith.addf %33, %35 : vector<8x128xf32>
    %cst_10 = arith.constant 0.000000e+00 : f32
    %37 = vector.broadcast %cst_10 : f32 to vector<8x128xf32>
    %38 = arith.maximumf %36, %37 : vector<8x128xf32>
    %39 = arith.truncf %38 : vector<8x128xf32> to vector<8x128xbf16>
    %c0_11 = arith.constant 0 : index
    %c0_12 = arith.constant 0 : index
    %40 = vector.load %arg6[%c0_11, %c0_12] : memref<128x128xbf16, #tpu.memory_space<vmem>>, vector<128x128xbf16>
    %cst_13 = arith.constant dense<0.000000e+00> : vector<8x128xf32>
    %41 = tpu.matmul %39, %40, %cst_13 {dimension_numbers = #tpu.dot_dimension_numbers<[1], [0], [0], [1], [0, 0, 1, 1], [], []>} : vector<8x128xbf16>, vector<128x128xbf16>, vector<8x128xf32> -> vector<8x128xf32>
    %c0_14 = arith.constant 0 : index
    %c0_15 = arith.constant 0 : index
    %42 = vector.load %arg7[%c0_14, %c0_15] : memref<1x128xf32, #tpu.memory_space<vmem>>, vector<1x128xf32>
    %43 = vector.broadcast %42 : vector<1x128xf32> to vector<8x128xf32>
    %44 = arith.addf %41, %43 : vector<8x128xf32>
    %c0_16 = arith.constant 0 : index
    %c0_17 = arith.constant 0 : index
    %45 = vector.load %arg8[%c0_16, %c0_17] : memref<8x128xf32, #tpu.memory_space<vmem>>, vector<8x128xf32>
    tpu.vector_store %arg8[%c0_16, %c0_17], %44 {strides = array<i32>} : memref<8x128xf32, #tpu.memory_space<vmem>>, vector<8x128xf32>,
    return
  }
  func.func @transform_0(%arg0: i32) -> (i32, i32) {
    %c0_i32 = arith.constant 0 : i32
    %c0_i32_0 = arith.constant 0 : i32
    return %arg0, %c0_i32 : i32, i32
  }
  func.func @transform_1(%arg0: i32) -> (i32, i32) {
    %c0_i32 = arith.constant 0 : i32
    %c0_i32_0 = arith.constant 0 : i32
    %c0_i32_1 = arith.constant 0 : i32
    return %c0_i32, %c0_i32_0 : i32, i32
  }
  func.func @transform_2(%arg0: i32) -> (i32, i32) {
    %c0_i32 = arith.constant 0 : i32
    %c0_i32_0 = arith.constant 0 : i32
    %c0_i32_1 = arith.constant 0 : i32
    return %c0_i32, %c0_i32_0 : i32, i32
  }
  func.func @transform_3(%arg0: i32) -> (i32, i32) {
    %c0_i32 = arith.constant 0 : i32
    %c0_i32_0 = arith.constant 0 : i32
    %c0_i32_1 = arith.constant 0 : i32
    return %c0_i32, %c0_i32_0 : i32, i32
  }
  func.func @transform_4(%arg0: i32) -> (i32, i32) {
    %c0_i32 = arith.constant 0 : i32
    %c0_i32_0 = arith.constant 0 : i32
    %c0_i32_1 = arith.constant 0 : i32
    return %c0_i32, %c0_i32_0 : i32, i32
  }
  func.func @transform_5(%arg0: i32) -> (i32, i32) {
    %c0_i32 = arith.constant 0 : i32
    %c0_i32_0 = arith.constant 0 : i32
    %c0_i32_1 = arith.constant 0 : i32
    return %c0_i32, %c0_i32_0 : i32, i32
  }
  func.func @transform_6(%arg0: i32) -> (i32, i32) {
    %c0_i32 = arith.constant 0 : i32
    %c0_i32_0 = arith.constant 0 : i32
    %c0_i32_1 = arith.constant 0 : i32
    return %c0_i32, %c0_i32_0 : i32, i32
  }
  func.func @transform_7(%arg0: i32) -> (i32, i32) {
    %c0_i32 = arith.constant 0 : i32
    %c0_i32_0 = arith.constant 0 : i32
    return %arg0, %c0_i32 : i32, i32
  }
}

</mosaic_0001>

<bundles_post_ra>
// kernel: dqn_forward.1
= control target key start
LH: loop header
LB: loop body
LE: loop exit
PB: predicated region body
PF: predicated region fallthrough
CT: control target
= control target key end

     0   :  { %v412_v0 = vmov 0   ;;  %v413_v2 = vmov 2   ;;  %v414_v4 = vmov 0.0   ;;  %v415_v6 = vmov 1   ;;  %s542_s0 = inlined_call_operand.vmem [shape: f32[8,4], index: 0, kind: input, shape index: {}]   ;;  %s543_s3 = inlined_call_operand.vmem [shape: bf16[128,128], index: 3, kind: input, shape index: {}]   ;;  %s544_s5 = inlined_call_operand.vmem [shape: bf16[128,128], index: 5, kind: input, shape index: {}]   ;;  %s545_s1 = inlined_call_operand.vmem [shape: f32[4,128], index: 1, kind: input, shape index: {}]   ;;  %s546_s2 = inlined_call_operand.vmem [shape: f32[1,128], index: 2, kind: input, shape index: {}]   ;;  %s547_s4 = inlined_call_operand.vmem [shape: f32[1,128], index: 4, kind: input, shape index: {}]   ;;  %s548_s6 = inlined_call_operand.vmem [shape: f32[1,128], index: 6, kind: input, shape index: {}]   ;;  %s549_s7 = inlined_call_operand.vmem [shape: f32[8,128], index: 7, kind: output, shape index: {}]  }
   0x1   :  { %391 = vset.pattern.permute.xlu0 %v412_v0  ;;  %v27_v1 = vld [vmem:[%s542_s0] sm:$0xff]  ;;  %393 = vset.pattern.permute.xlu1 %v413_v2  ;;  %v397_v5 = vld [vmem:[%s543_s3 + $0x8] sm:$0xff]   ;;  %v416_v7 = vmov 3   ;;  %v398_v8 = vld [vmem:[%s543_s3 + $0x10] sm:$0xff]   ;;  %vm417_vm0 = vmmov 0   ;;  %v41_v20 = vlaneseq }
   0x2   :  { %38 = vperm.xlu0 %391, %v27_v1   ;;  %58 = vperm.xlu1 %393, %v27_v1   ;;  %v396_v3 = vld [vmem:[%s543_s3] sm:$0xff]   ;;  %v399_v9 = vld [vmem:[%s543_s3 + $0x18] sm:$0xff]   ;;  %v401_v11 = vld [vmem:[%s543_s3 + $0x28] sm:$0xff]  }
   0x3   :  { %345 = vmatprep.subr.bf16.mxu0 %v414_v4  ;;  %365 = vmatprep.subr.bf16.mxu1 %v414_v4  ;;  %v400_v10 = vld [vmem:[%s543_s3 + $0x20] sm:$0xff]   ;;  %v405_v13 = vld [vmem:[%s544_s5 + $0x8] sm:$0xff]   ;;  %v402_v14 = vld [vmem:[%s543_s3 + $0x30] sm:$0xff]   ;;  %v42_v21 = vshrl.u32 %v41_v20, 7 }
   0x4   :  { %346 = vmatpush3.bf16.msra.mxu0 %v396_v3  ;;  %361 = vmatprep.mubr.msk.bf16.mxu0 %vm417_vm0, %v414_v4  ;;  %v404_v12 = vld [vmem:[%s544_s5] sm:$0xff]   ;;  %v406_v15 = vld [vmem:[%s544_s5 + $0x10] sm:$0xff]   ;;  %v403_v16 = vld [vmem:[%s543_s3 + $0x38] sm:$0xff]  }
   0x5   :  { %347 = vmatprep.subr.bf16.mxu0 %v414_v4  ;;  %381 = vmatprep.mubr.msk.bf16.mxu1 %vm417_vm0, %v414_v4  ;;  %v407_v17 = vld [vmem:[%s544_s5 + $0x18] sm:$0xff]   ;;  %v408_v18 = vld [vmem:[%s544_s5 + $0x20] sm:$0xff]   ;;  %v409_v19 = vld [vmem:[%s544_s5 + $0x28] sm:$0xff]   ;;  %v43_v22 = vsub.s32 0, %v42_v21  ;;  %v53_v25 = vsub.s32 1, %v42_v21  ;;  %v63_v27 = vsub.s32 2, %v42_v21 }
   0x6   :  { %392 = vset.pattern.permute.xlu0 %v415_v6  ;;  %394 = vset.pattern.permute.xlu1 %v416_v7  ;;  %v28_v23 = vld [vmem:[%s545_s1] sm:$0xf]  ;;  %v73_v29 = vsub.s32 3, %v42_v21  ;;  %v410_v46 = vld [vmem:[%s544_s5 + $0x30] sm:$0xff]   ;;  %v411_v47 = vld [vmem:[%s544_s5 + $0x38] sm:$0xff]  }
   0x7   :  { %48 = vperm.xlu0 %392, %v27_v1   ;;  %68 = vperm.xlu1 %394, %v27_v1   ;;  %v44_v24 = vrot.slane %v28_v23, %v43_v22  ;;  %v54_v31 = vrot.slane %v28_v23, %v53_v25  ;;  %v308_v32 = vld [vmem:[%s546_s2] ss:$0 sm:$0xff]  ;;  %v64_v33 = vrot.slane %v28_v23, %v63_v27 }
   0x8   :  { %348 = vmatpush3.bf16.msra.mxu0 %v397_v5  ;;  %366 = vmatpush3.bf16.msra.mxu1 %v404_v12  ;;  %v74_v34 = vrot.slane %v28_v23, %v73_v29  ;;  %v309_v48 = vld [vmem:[%s547_s4] ss:$0 sm:$0xff] }
   0x9   :  { %349 = vmatprep.subr.bf16.mxu0 %v414_v4  ;;  %367 = vmatprep.subr.bf16.mxu1 %v414_v4  ;;  %v318_v56 = vld [vmem:[%s548_s6] ss:$0 sm:$0xff] }
   0xb   :  { %395 = vset.pattern.permute.xlu0 %v416_v7 }
   0xc   :  { %350 = vmatpush3.bf16.msra.mxu0 %v398_v8  ;;  %368 = vmatpush3.bf16.msra.mxu1 %v405_v13 }
   0xd   :  { %351 = vmatprep.subr.bf16.mxu0 %v414_v4  ;;  %369 = vmatprep.subr.bf16.mxu1 %v414_v4 }
  0x10   :  { %352 = vmatpush3.bf16.msra.mxu0 %v399_v9  ;;  %370 = vmatpush3.bf16.msra.mxu1 %v406_v15 }
  0x11   :  { %353 = vmatprep.subr.bf16.mxu0 %v414_v4  ;;  %371 = vmatprep.subr.bf16.mxu1 %v414_v4 }
  0x14   :  { %354 = vmatpush3.bf16.msra.mxu0 %v400_v10  ;;  %372 = vmatpush3.bf16.msra.mxu1 %v407_v17 }
  0x15   :  { %355 = vmatprep.subr.bf16.mxu0 %v414_v4  ;;  %373 = vmatprep.subr.bf16.mxu1 %v414_v4 }
  0x18   :  { %356 = vmatpush3.bf16.msra.mxu0 %v401_v11  ;;  %374 = vmatpush3.bf16.msra.mxu1 %v408_v18 }
  0x19   :  { %357 = vmatprep.subr.bf16.mxu0 %v414_v4  ;;  %375 = vmatprep.subr.bf16.mxu1 %v414_v4 }
  0x1c   :  { %358 = vmatpush3.bf16.msra.mxu0 %v402_v14  ;;  %376 = vmatpush3.bf16.msra.mxu1 %v409_v19 }
  0x1d   :  { %359 = vmatprep.subr.bf16.mxu0 %v414_v4  ;;  %377 = vmatprep.subr.bf16.mxu1 %v414_v4 }
  0x20   :  { %360 = vmatpush3.bf16.msra.mxu0 %v403_v16  ;;  %378 = vmatpush3.bf16.msra.mxu1 %v410_v46 }
  0x21   :  { %379 = vmatprep.subr.bf16.mxu1 %v414_v4 }
  0x24   :  { %380 = vmatpush3.bf16.msra.mxu1 %v411_v47 }
  0x81   :  { %v39_v26 = vpop.permute.xlu0 %38  ;;  %v59_v28 = vpop.permute.xlu1 %58 }
  0x82   :  { %v45_v30 = vmul.f32 %v44_v24, %v39_v26  ;;  %v65_v39 = vmul.f32 %v64_v33, %v59_v28 }
  0x84   :  { %v46_v37 = vadd.f32 %v308_v32, %v45_v30 }
  0x86   :  { %v49_v35 = vpop.permute.xlu0 %48  ;;  %v69_v36 = vpop.permute.xlu1 %68 }
  0x87   :  { %v55_v38 = vmul.f32 %v54_v31, %v49_v35  ;;  %v75_v41 = vmul.f32 %v74_v34, %v69_v36 }
  0x89   :  { %v56_v40 = vadd.f32 %v55_v38, %v46_v37 }
  0x8b   :  { %v66_v42 = vadd.f32 %v65_v39, %v56_v40 }
  0x8d   :  { %v76_v43 = vadd.f32 %v75_v41, %v66_v42 }
  0x8f   :  { %v77_v44 = vmax.f32 %v76_v43, 0.0 }
  0x91   :  { %v78_v45 = vpack.c.bf16 %v77_v44, %v77_v44 }
  0x93   :  { %362 = vmatmul.mubr.bf16.vlgmr.msra.gmra.mrb[0].mxu0 %v78_v45 }
 0x166   :  { %v184_v49 = vpop.f32.mrb[0].mxu0 }
 0x167   :  { %v185_v50 = vadd.f32 %v309_v48, %v184_v49  ;;  %v363_v51 = vpop.f32.mrb[1].mxu0 }
 0x168   :  { %v187_v52 = vpop.f32.mrb[2].mxu0 }
 0x169   :  { %v190_v53 = vmax.f32 %v185_v50, 0.0  ;;  %v364_v54 = vpop.f32.mrb[3].mxu0 }
 0x16b   :  { %v191_v55 = vpack.c.bf16 %v190_v53, %v190_v53 }
 0x16d   :  { %382 = vmatmul.mubr.bf16.vlgmr.msra.gmra.mrb[0].mxu1 %v191_v55 }
 0x240   :  { %v297_v57 = vpop.f32.mrb[0].mxu1 }
 0x241   :  { %v298_v58 = vadd.f32 %v318_v56, %v297_v57  ;;  %v383_v59 = vpop.f32.mrb[1].mxu1 }
 0x242   :  { %v300_v60 = vpop.f32.mrb[2].mxu1 }
 0x243   :  { %303 = vst [vmem:[%s549_s7] sm:$0xff] %v298_v58  ;;  %v384_v61 = vpop.f32.mrb[3].mxu1 }

</bundles_post_ra>
